<compile_context>
chip_gen: v5e
topology: v5e:2x2
jax: 0.10.0
libtpu: 0.0.40
codegen_flags: <defaults>
</compile_context>

<pallas_src>
import jax
import jax.numpy as jnp
from jax.experimental import pallas as pl
from jax.experimental.pallas import tpu as pltpu

_LANE = 128


def _round_up(x, m):
    return ((x + m - 1) // m) * m


def _make_mlp_kernel(num_hidden):
    """Kernel refs: (x, w0, b0, w1, b1, ..., w_out, b_out, o).

    x:  (TB, in_f)  bf16                 (unpadded feature axis)
    wi: (K_i, out_pad_i) bf16            (pre-transposed, zero-padded)
    bi: (1, out_pad_i) f32               (last layer: padded lanes = -1e30)
    o:  (TB, out_pad) f32
    """

    def kernel(x_ref, *refs):
        o_ref = refs[-1]
        params = refs[:-1]

        h = x_ref[...]  # bf16 activation tile
        # Hidden layers: Linear -> ReLU (-> dropout == identity in eval mode).
        for i in range(num_hidden):
            w = params[2 * i][...]          # bf16
            b = params[2 * i + 1][...]      # f32
            acc = jnp.dot(h, w, preferred_element_type=jnp.float32) + b
            # ReLU in f32, cast once for the next MXU op.
            h = jnp.maximum(acc, 0.0).astype(jnp.bfloat16)

        # Output layer. Padded lanes get 0*w + (-1e30) from the baked bias, so
        # they contribute exp(-huge) == 0 to the softmax denominator.
        w = params[2 * num_hidden][...]
        b = params[2 * num_hidden + 1][...]
        logits = jnp.dot(h, w, preferred_element_type=jnp.float32) + b

        # log_softmax along the feature (lane) axis, all f32.
        m = jnp.max(logits, axis=-1, keepdims=True)
        shifted = logits - m
        lse = jnp.log(jnp.sum(jnp.exp(shifted), axis=-1, keepdims=True))
        o_ref[...] = (shifted - lse).astype(o_ref.dtype)

    return kernel


def prepare_flower_params(weights, biases):
    """One-time parameter preparation (hoisted out of the forward path).

    weights: list of PyTorch-layout matrices [out_features, in_features]
             (hidden layers in order, then the output layer).
    biases:  list of [out_features] vectors, same order.

    Returns (layers, out_size) where layers is a list of
    (w_bf16 [K, out_pad], b_f32 [1, out_pad]) tuples. Layer 0 keeps K = in_f
    (x is fed unpadded); later layers' K matches the previous layer's padded
    output width. The LAST layer's padded bias lanes are set to -1e30 so the
    lane mask lives in the bias for free.
    """
    assert len(weights) == len(biases) and len(weights) >= 1
    n = len(weights)
    layers = []
    for idx, (w, b) in enumerate(zip(weights, biases)):
        w = jnp.asarray(w, jnp.float32)
        b = jnp.asarray(b, jnp.float32)
        out_f, in_f = w.shape
        in_p = in_f if idx == 0 else _round_up(in_f, _LANE)
        out_p = _round_up(out_f, _LANE)
        wt = jnp.zeros((in_p, out_p), jnp.float32).at[:in_f, :out_f].set(w.T)
        if idx == n - 1:
            bt = jnp.full((1, out_p), -1e30, jnp.float32).at[0, :out_f].set(b)
        else:
            bt = jnp.zeros((1, out_p), jnp.float32).at[0, :out_f].set(b)
        layers.append((wt.astype(jnp.bfloat16), bt))
    out_size = int(jnp.asarray(weights[-1]).shape[0])
    return layers, out_size


def flower_network_forward(x, prepared, *, block_batch=None):
    """x: [B, input_size]; prepared = prepare_flower_params(...).
    Returns log-probabilities [B, output_size] (f32)."""
    layers, out_size = prepared
    num_hidden = len(layers) - 1

    batch, in_f = x.shape
    assert in_f == layers[0][0].shape[0], "input width mismatch with layer 0"
    out_pad = layers[-1][0].shape[1]

    # Batch tile: >= 2 grid steps when batch >= 256 (engages both TensorCores
    # on v7x via dimension_semantics=("parallel",)); cap at 256 rows so the
    # f32 softmax epilogue stays within vreg budget.
    if block_batch is None:
        if batch >= 256:
            tb = min(256, _round_up(pl.cdiv(batch, 2), 8))
        else:
            tb = _round_up(max(batch, 8), 8)
    else:
        tb = block_batch
    batch_pad = _round_up(batch, tb)

    # Only wrapper pass: f32 -> bf16 cast (plus batch-row pad when needed).
    xb = jnp.asarray(x).astype(jnp.bfloat16)
    if batch_pad != batch:
        xb = jnp.pad(xb, ((0, batch_pad - batch), (0, 0)))

    operands = [xb]
    in_specs = [pl.BlockSpec((tb, in_f), lambda i: (i, 0))]
    for w, b in layers:
        operands += [w, b]
        # Constant index_map -> weights/biases stay resident across grid steps.
        in_specs.append(pl.BlockSpec(w.shape, lambda i: (0, 0)))
        in_specs.append(pl.BlockSpec(b.shape, lambda i: (0, 0)))

    out_padded = pl.pallas_call(
        _make_mlp_kernel(num_hidden),
        out_shape=jax.ShapeDtypeStruct((batch_pad, out_pad), jnp.float32),
        grid=(batch_pad // tb,),
        in_specs=in_specs,
        out_specs=pl.BlockSpec((tb, out_pad), lambda i: (i, 0)),
        compiler_params=pltpu.CompilerParams(
            dimension_semantics=("parallel",),
            vmem_limit_bytes=32 * 1024 * 1024,
        ),
    )(*operands)

    # NOTE: never consume the padded array directly (padded lanes hold ~-1e30,
    # padded rows are garbage). At a real jit boundary this slice fuses into
    # the consumer.
    return out_padded[:batch, :out_size]


def _init_linear(key, in_features, out_features):
    """Deterministic PyTorch-style init: U(-1/sqrt(fan_in), 1/sqrt(fan_in))."""
    kw, kb = jax.random.split(key)
    bound = 1.0 / jnp.sqrt(jnp.float32(in_features))
    w = jax.random.uniform(kw, (out_features, in_features), jnp.float32,
                           minval=-bound, maxval=bound)
    b = jax.random.uniform(kb, (out_features,), jnp.float32,
                           minval=-bound, maxval=bound)
    return w, b


def _reference_log_probs(x, weights, biases):
    """Pure-JAX reference with the same bf16-matmul / f32-epilogue recipe."""
    h = jnp.asarray(x, jnp.float32).astype(jnp.bfloat16)
    n = len(weights)
    z = None
    for i, (w, b) in enumerate(zip(weights, biases)):
        wt = jnp.asarray(w, jnp.float32).T.astype(jnp.bfloat16)
        z = jnp.dot(h, wt, preferred_element_type=jnp.float32) + jnp.asarray(b, jnp.float32)
        if i < n - 1:
            h = jnp.maximum(z, 0.0).astype(jnp.bfloat16)
    return jax.nn.log_softmax(z, axis=-1)


if __name__ == "__main__":
    # Shapes consistent with the module's forward: x is [batch, input_size].
    batch = 256
    input_size = 32
    hidden_layers = [64, 32]
    output_size = 10

    key = jax.random.PRNGKey(0)
    keys = jax.random.split(key, len(hidden_layers) + 2)

    # Build parameters layer by layer (hidden layers, then output layer).
    weights, biases = [], []
    fan_in = input_size
    for i, h in enumerate(hidden_layers):
        w, b = _init_linear(keys[i], fan_in, h)
        weights.append(w)
        biases.append(b)
        fan_in = h
    w_out, b_out = _init_linear(keys[len(hidden_layers)], fan_in, output_size)
    weights.append(w_out)
    biases.append(b_out)

    x = jax.random.normal(keys[-1], (batch, input_size), jnp.float32)

    # One-time parameter prep (transpose / pad / bf16-cast / bias mask-bake),
    # then forward. Default tile heuristic -> tb=128, grid=(2,) at batch=256.
    prepared = prepare_flower_params(weights, biases)
    out = flower_network_forward(x, prepared)
    out = jax.block_until_ready(out)

    # Sanity: shape, rows exponentiate-sum to 1, and match the JAX reference.
    assert out.shape == (batch, output_size)
    row_sums = jnp.exp(out).sum(axis=1)
    assert bool(jnp.allclose(row_sums, 1.0, atol=1e-4))
    ref = _reference_log_probs(x, weights, biases)
    assert bool(jnp.allclose(out, ref, atol=5e-3, rtol=5e-3))

    print("KERNEL_OK")
</pallas_src>

<mosaic_0001>
module attributes {stable_mosaic.version = 11 : i64} {
  func.func @kernel(%arg0: i32, %arg1: memref<128x32xbf16, #tpu.memory_space<vmem>>, %arg2: memref<32x128xbf16, #tpu.memory_space<vmem>>, %arg3: memref<1x128xf32, #tpu.memory_space<vmem>>, %arg4: memref<128x128xbf16, #tpu.memory_space<vmem>>, %arg5: memref<1x128xf32, #tpu.memory_space<vmem>>, %arg6: memref<128x128xbf16, #tpu.memory_space<vmem>>, %arg7: memref<1x128xf32, #tpu.memory_space<vmem>>, %arg8: memref<128x128xf32, #tpu.memory_space<vmem>>) attributes {dimension_semantics = [#tpu.dimension_semantics<parallel>], iteration_bounds = array<i64: 2>, scalar_prefetch = 0 : i64, scratch_operands = 0 : i64, tpu.core_type = #tpu.core_type<tc>, window_params = [{transform_indices = @transform_0, window_bounds = array<i64: 128, 32>}, {pipeline_mode = #tpu.pipeline_mode<synchronous>, transform_indices = @transform_1, window_bounds = array<i64: 32, 128>}, {pipeline_mode = #tpu.pipeline_mode<synchronous>, transform_indices = @transform_2, window_bounds = array<i64: 1, 128>}, {pipeline_mode = #tpu.pipeline_mode<synchronous>, transform_indices = @transform_3, window_bounds = array<i64: 128, 128>}, {pipeline_mode = #tpu.pipeline_mode<synchronous>, transform_indices = @transform_4, window_bounds = array<i64: 1, 128>}, {pipeline_mode = #tpu.pipeline_mode<synchronous>, transform_indices = @transform_5, window_bounds = array<i64: 128, 128>}, {pipeline_mode = #tpu.pipeline_mode<synchronous>, transform_indices = @transform_6, window_bounds = array<i64: 1, 128>}, {transform_indices = @transform_7, window_bounds = array<i64: 128, 128>}]} {
    %c0 = arith.constant 0 : index
    %c0_0 = arith.constant 0 : index
    %0 = vector.load %arg1[%c0, %c0_0] : memref<128x32xbf16, #tpu.memory_space<vmem>>, vector<128x32xbf16>
    %c0_1 = arith.constant 0 : index
    %c0_2 = arith.constant 0 : index
    %1 = vector.load %arg2[%c0_1, %c0_2] : memref<32x128xbf16, #tpu.memory_space<vmem>>, vector<32x128xbf16>
    %c0_3 = arith.constant 0 : index
    %c0_4 = arith.constant 0 : index
    %2 = vector.load %arg3[%c0_3, %c0_4] : memref<1x128xf32, #tpu.memory_space<vmem>>, vector<1x128xf32>
    %cst = arith.constant dense<0.000000e+00> : vector<128x128xf32>
    %3 = tpu.matmul %0, %1, %cst {dimension_numbers = #tpu.dot_dimension_numbers<[1], [0], [0], [1], [0, 0, 1, 1], [], []>} : vector<128x32xbf16>, vector<32x128xbf16>, vector<128x128xf32> -> vector<128x128xf32>
    %4 = vector.broadcast %2 : vector<1x128xf32> to vector<128x128xf32>
    %5 = arith.addf %3, %4 : vector<128x128xf32>
    %cst_5 = arith.constant 0.000000e+00 : f32
    %6 = vector.broadcast %cst_5 : f32 to vector<128x128xf32>
    %7 = arith.maximumf %5, %6 : vector<128x128xf32>
    %8 = arith.truncf %7 : vector<128x128xf32> to vector<128x128xbf16>
    %c0_6 = arith.constant 0 : index
    %c0_7 = arith.constant 0 : index
    %9 = vector.load %arg4[%c0_6, %c0_7] : memref<128x128xbf16, #tpu.memory_space<vmem>>, vector<128x128xbf16>
    %c0_8 = arith.constant 0 : index
    %c0_9 = arith.constant 0 : index
    %10 = vector.load %arg5[%c0_8, %c0_9] : memref<1x128xf32, #tpu.memory_space<vmem>>, vector<1x128xf32>
    %cst_10 = arith.constant dense<0.000000e+00> : vector<128x128xf32>
    %11 = tpu.matmul %8, %9, %cst_10 {dimension_numbers = #tpu.dot_dimension_numbers<[1], [0], [0], [1], [0, 0, 1, 1], [], []>} : vector<128x128xbf16>, vector<128x128xbf16>, vector<128x128xf32> -> vector<128x128xf32>
    %12 = vector.broadcast %10 : vector<1x128xf32> to vector<128x128xf32>
    %13 = arith.addf %11, %12 : vector<128x128xf32>
    %cst_11 = arith.constant 0.000000e+00 : f32
    %14 = vector.broadcast %cst_11 : f32 to vector<128x128xf32>
    %15 = arith.maximumf %13, %14 : vector<128x128xf32>
    %16 = arith.truncf %15 : vector<128x128xf32> to vector<128x128xbf16>
    %c0_12 = arith.constant 0 : index
    %c0_13 = arith.constant 0 : index
    %17 = vector.load %arg6[%c0_12, %c0_13] : memref<128x128xbf16, #tpu.memory_space<vmem>>, vector<128x128xbf16>
    %c0_14 = arith.constant 0 : index
    %c0_15 = arith.constant 0 : index
    %18 = vector.load %arg7[%c0_14, %c0_15] : memref<1x128xf32, #tpu.memory_space<vmem>>, vector<1x128xf32>
    %cst_16 = arith.constant dense<0.000000e+00> : vector<128x128xf32>
    %19 = tpu.matmul %16, %17, %cst_16 {dimension_numbers = #tpu.dot_dimension_numbers<[1], [0], [0], [1], [0, 0, 1, 1], [], []>} : vector<128x128xbf16>, vector<128x128xbf16>, vector<128x128xf32> -> vector<128x128xf32>
    %20 = vector.broadcast %18 : vector<1x128xf32> to vector<128x128xf32>
    %21 = arith.addf %19, %20 : vector<128x128xf32>
    %cst_17 = arith.constant dense<0xFF800000> : vector<128xf32>
    %22 = vector.multi_reduction <maximumf>, %21, %cst_17 [1] : vector<128x128xf32> to vector<128xf32>
    %23 = vector.shape_cast %22 : vector<128xf32> to vector<128x1xf32>
    %24 = vector.broadcast %23 : vector<128x1xf32> to vector<128x128xf32>
    %25 = arith.subf %21, %24 : vector<128x128xf32>
    %26 = math.exp %25 : vector<128x128xf32>
    %cst_18 = arith.constant dense<0.000000e+00> : vector<128xf32>
    %27 = vector.multi_reduction <add>, %26, %cst_18 [1] : vector<128x128xf32> to vector<128xf32>
    %28 = vector.shape_cast %27 : vector<128xf32> to vector<128x1xf32>
    %29 = math.log %28 : vector<128x1xf32>
    %30 = vector.broadcast %29 : vector<128x1xf32> to vector<128x128xf32>
    %31 = arith.subf %25, %30 : vector<128x128xf32>
    %c0_19 = arith.constant 0 : index
    %c0_20 = arith.constant 0 : index
    %32 = vector.load %arg8[%c0_19, %c0_20] : memref<128x128xf32, #tpu.memory_space<vmem>>, vector<128x128xf32>
    tpu.vector_store %arg8[%c0_19, %c0_20], %31 {strides = array<i32>} : memref<128x128xf32, #tpu.memory_space<vmem>>, vector<128x128xf32>,
    return
  }
  func.func @transform_0(%arg0: i32) -> (i32, i32) {
    %c0_i32 = arith.constant 0 : i32
    %c0_i32_0 = arith.constant 0 : i32
    return %arg0, %c0_i32 : i32, i32
  }
  func.func @transform_1(%arg0: i32) -> (i32, i32) {
    %c0_i32 = arith.constant 0 : i32
    %c0_i32_0 = arith.constant 0 : i32
    %c0_i32_1 = arith.constant 0 : i32
    return %c0_i32, %c0_i32_0 : i32, i32
  }
  func.func @transform_2(%arg0: i32) -> (i32, i32) {
    %c0_i32 = arith.constant 0 : i32
    %c0_i32_0 = arith.constant 0 : i32
    %c0_i32_1 = arith.constant 0 : i32
    return %c0_i32, %c0_i32_0 : i32, i32
  }
  func.func @transform_3(%arg0: i32) -> (i32, i32) {
    %c0_i32 = arith.constant 0 : i32
    %c0_i32_0 = arith.constant 0 : i32
    %c0_i32_1 = arith.constant 0 : i32
    return %c0_i32, %c0_i32_0 : i32, i32
  }
  func.func @transform_4(%arg0: i32) -> (i32, i32) {
    %c0_i32 = arith.constant 0 : i32
    %c0_i32_0 = arith.constant 0 : i32
    %c0_i32_1 = arith.constant 0 : i32
    return %c0_i32, %c0_i32_0 : i32, i32
  }
  func.func @transform_5(%arg0: i32) -> (i32, i32) {
    %c0_i32 = arith.constant 0 : i32
    %c0_i32_0 = arith.constant 0 : i32
    %c0_i32_1 = arith.constant 0 : i32
    return %c0_i32, %c0_i32_0 : i32, i32
  }
  func.func @transform_6(%arg0: i32) -> (i32, i32) {
    %c0_i32 = arith.constant 0 : i32
    %c0_i32_0 = arith.constant 0 : i32
    %c0_i32_1 = arith.constant 0 : i32
    return %c0_i32, %c0_i32_0 : i32, i32
  }
  func.func @transform_7(%arg0: i32) -> (i32, i32) {
    %c0_i32 = arith.constant 0 : i32
    %c0_i32_0 = arith.constant 0 : i32
    return %arg0, %c0_i32 : i32, i32
  }
}

</mosaic_0001>

<bundles_post_ra>
// kernel: tpu_custom_call.1
= control target key start
LH: loop header
LB: loop body
LE: loop exit
PB: predicated region body
PF: predicated region fallthrough
CT: control target
= control target key end

     0   :  { %12 = vsyncpa [#allocation3], 0  ;;  %s1658_s0 = inlined_call_operand.vmem [shape: bf16[256,32], index: 0, kind: input, shape index: {}]   ;;  %s1659_s1 = inlined_call_operand.vmem [shape: bf16[32,128], index: 1, kind: input, shape index: {}]   ;;  %s1660_s2 = inlined_call_operand.vmem [shape: f32[1,128], index: 2, kind: input, shape index: {}]   ;;  %s1661_s3 = inlined_call_operand.vmem [shape: bf16[128,128], index: 3, kind: input, shape index: {}]   ;;  %s1662_s4 = inlined_call_operand.vmem [shape: f32[1,128], index: 4, kind: input, shape index: {}]   ;;  %s1663_s5 = inlined_call_operand.vmem [shape: bf16[128,128], index: 5, kind: input, shape index: {}]   ;;  %s1664_s6 = inlined_call_operand.vmem [shape: f32[1,128], index: 6, kind: input, shape index: {}]   ;;  %s1665_s7 = inlined_call_operand.hbm [shape: f32[256,128], index: 7, kind: output, shape index: {}]  }
   0x1   :  { %14 = vsyncpa [#allocation3 + $0x1], 0  ;;  %s1348_s24 = smov 0   ;;  %s1350_s25 = smov 0  }
   0x2   :  { %s1352_s26 = smov 0   ;;  %s1354_s27 = smov 0  }
   0x3 LB: > { %s1369_s28 = sadd.s32 4294967295, %s1304_s27   ;;  %s967_s29 = sadd.s32 4294967294, %s1304_s27   ;;  %s1304_s27 = sphi %s1354_s27, %s1671_s27   ;;  %s1300_s26 = sphi %s1352_s26, %s1670_s26   ;;  %s1296_s25 = sphi %s1350_s25, %s1669_s25   ;;  %s1292_s24 = sphi %s1348_s24, %s1668_s24  }
   0x4   : > { %s1373_s30 = sadd.s32 1, %s1304_s27   ;;  %s179_s8 = sadd.s32 1, %s1300_s26 }
   0x5   : > { %s176_s9 = ssub.s32 %s1304_s27, %s1373_s30  ;;  %p189_p0 = scmp.ne.s32.totalorder %s1300_s26, %s1296_s25 }
   0x6   : > { %p177_p1 = scmp.eq.s32.totalorder %s176_s9, 0  ;;  %p190_p2 = scmp.eq.s32.totalorder %s1369_s28, 1 }
   0x7   : > { %p195_p3 = scmp.ne.s32.totalorder %s1296_s25, %s1292_s24  ;;  %p196_p4 = scmp.eq.s32.totalorder %s967_s29, 1 }
   0x8   : > { %s1384_s10 = scalar_select %p177_p1, %s1300_s26, %s179_s8  }
   0x9   : > { %p1386_p5 = por %p190_p2, %p189_p0  ;;  %p1390_p6 = por %p196_p4, %p195_p3 }
   0xa   : > { %p970_p7 = scmp.ge.s32.totalorder %s1304_s27, 1  ;;  %p241_p8 = scmp.lt.s32.totalorder %s1304_s27, 3 }
   0xc   : > { %p242_p9 = pnand %p970_p7, %p241_p8 }
   0xd   : > { %s972_s15 = sshll.u32 (!%p242_p9), %s1369_s28, 4  ;;  %s1117_s22 = sshll.u32 (!%p242_p9), %s1369_s28, 7 }
   0xe   : > { %245 = sbr.rel (%p242_p9) target bundleno = 825 (0x339), region = 48  ;;  %p274_p10 = scmp.lt.s32.totalorder (!%p242_p9), %s972_s15, 31 }
   0xf   : > { %s901_s8 = scalar_lea.hbm (!%p242_p9), %s1665_s7, %s1117_s22  ;;  %s1262_s17 = scalar_lea.hbm (!%p242_p9), %s1665_s7, 256 }
  0x13   : > { %v1100_v0 = vld [vmem:[%s1659_s1 + $0x8] sm:$0xff]  ;;  %v1099_v1 = vld [vmem:[%s1659_s1] sm:$0xff]  ;;  %s1673_s15 = smov (!%p274_p10, %s972_s15), 31  ;;  %vm357_vm0 = vcmask 261120   ;;  %v1108_v7 = vld [vmem:[%s1661_s3 + $0x38] sm:$0xff] }
  0x14   : > { %388 = vmatpush.bf16.msra.mxu0 %v1100_v0  ;;  %s973_s18 = sshll.u32 %s1673_s15, 2  ;;  %523 = vmatpush.bf16.msra.mxu1 %v1108_v7  ;;  %v1107_v9 = vld [vmem:[%s1661_s3 + $0x30] sm:$0xff]  ;;  %v1106_v10 = vld [vmem:[%s1661_s3 + $0x28] sm:$0xff]  ;;  %v1105_v11 = vld [vmem:[%s1661_s3 + $0x20] sm:$0xff] }
  0x15   : > { %s1406_s21 = scalar_lea.vmem %s1658_s0, %s973_s18  ;;  %1118 = vmatpush.bf16.msra.mxu3 %v1108_v7  ;;  %v1104_v12 = vld [vmem:[%s1661_s3 + $0x18] sm:$0xff]  ;;  %v1103_v14 = vld [vmem:[%s1661_s3 + $0x10] sm:$0xff]  ;;  %v1102_v15 = vld [vmem:[%s1661_s3 + $0x8] sm:$0xff]  ;;  %s270_s18 = sand.u32 1, %s1296_s25  }
  0x16   : > { %v1091_v2 = vld [vmem:[%s1406_s21] sm:$0xff]  ;;  %v1092_v3 = vld [vmem:[%s1406_s21 + $0x8] sm:$0xff]  ;;  %v1093_v4 = vld [vmem:[%s1406_s21 + $0x10] sm:$0xff]  ;;  %s971_s19 = sshll.u32 %s270_s18, 7  ;;  %s890_s28 = scalar_lea.sflag [#allocation3], %s270_s18 }
  0x17   : > { %v1094_v5 = vld [vmem:[%s1406_s21 + $0x18] sm:$0xff]  ;;  %v1095_v6 = vld [vmem:[%s1406_s21 + $0x20] sm:$0xff]  ;;  %v1096_v8 = vld [vmem:[%s1406_s21 + $0x28] sm:$0xff]  ;;  %s1591_s20 = scalar_lea.vmem [#allocation2], %s971_s19 }
  0x18   : > { %389 = vmatpush.bf16.msra.mxu0 %v1099_v1  ;;  %524 = vmatpush.bf16.msra.mxu1 %v1107_v9  ;;  %v1097_v13 = vld [vmem:[%s1406_s21 + $0x30] sm:$0xff]  ;;  %v1101_v16 = vld [vmem:[%s1661_s3] sm:$0xff]  ;;  %v1098_v17 = vld [vmem:[%s1406_s21 + $0x38] sm:$0xff]  ;;  %s902_s9 = sshll.u32 %s1591_s20, 4  ;;  %s904_s21 = sshll.u32 %s901_s8, 4  ;;  %s903_s9 = int_to_ptr.vmem [resolvable:$true] %s902_s9  ;;  %s905_s21 = int_to_ptr.hbm [resolvable:$true] %s904_s21 }
  0x19   : > { %1119 = vmatpush.bf16.msra.mxu3 %v1107_v9  ;;  %v1451_v19 = vld [vmem:[%s1660_s2] ss:$0 sm:$0xff]  ;;  %v1116_v58 = vld [vmem:[%s1663_s5 + $0x38] sm:$0xff]  ;;  %v1115_v62 = vld [vmem:[%s1663_s5 + $0x30] sm:$0xff]  ;;  %s1256_s13 = sshra.s32 %s905_s21, 4  ;;  %s1257_s13 = int_to_ptr.hbm [resolvable:$true] %s1256_s13 }
  0x1a   : > { %664 = vmatpush.bf16.msra.mxu2 %v1116_v58  ;;  %v1114_v0 = vld [vmem:[%s1663_s5 + $0x28] sm:$0xff]  ;;  %v1113_v1 = vld [vmem:[%s1663_s5 + $0x20] sm:$0xff]  ;;  %v1111_v9 = vld [vmem:[%s1663_s5 + $0x10] sm:$0xff]  ;;  %s1258_s14 = scalar_lea.hbm %s1257_s13, 128  ;;  %p1263_p0 = scmp.lt.s32.totalorder %s1257_s13, %s1665_s7 }
  0x1b   : > { %1014 = vmatmul.msk.bf16.vlgmr.msra.gmra.mxu0 %vm357_vm0, %v1091_v2  ;;  %p1259_p11 = scmp.ne.s32.totalorder %s1257_s13, %s1258_s14  ;;  %p1264_p1 = scmp.lt.s32.totalorder %s1262_s17, %s1258_s14 }
  0x1c   : > { %525 = vmatpush.bf16.msra.mxu1 %v1106_v10 }
  0x1d   : > { %1120 = vmatpush.bf16.msra.mxu3 %v1106_v10  ;;  %p1260_p12 = pnand %p1259_p11, %p1386_p5  ;;  %p1265_p2 = por %p1264_p1, %p1263_p0 }
  0x1e   : > { %665 = vmatpush.bf16.msra.mxu2 %v1115_v62 }
  0x1f   : > { %p1261_p13 = pneg %p1260_p12 }
  0x20   : > { %526 = vmatpush.bf16.msra.mxu1 %v1105_v11 }
  0x21   : > { %1121 = vmatpush.bf16.msra.mxu3 %v1105_v11  ;;  %v1110_v11 = vld [vmem:[%s1663_s5 + $0x8] sm:$0xff]  ;;  %p1266_p3 = pnand %p1265_p2, %p1261_p13 }
  0x22   : > { %666 = vmatpush.bf16.msra.mxu2 %v1114_v0 }
  0x24   : > { %527 = vmatpush.bf16.msra.mxu1 %v1104_v12 }
  0x25   : > { %1122 = vmatpush.bf16.msra.mxu3 %v1104_v12  ;;  %v1109_v12 = vld [vmem:[%s1663_s5] sm:$0xff] }
  0x26   : > { %667 = vmatpush.bf16.msra.mxu2 %v1113_v1 }
  0x28   : > { %528 = vmatpush.bf16.msra.mxu1 %v1103_v14 }
  0x29   : > { %1123 = vmatpush.bf16.msra.mxu3 %v1103_v14 }
  0x2b   : > { %1015 = vmatmul.msk.bf16.gmra.mxu0 %vm357_vm0, %v1092_v3 }
  0x2c   : > { %529 = vmatpush.bf16.msra.mxu1 %v1102_v15 }
  0x2d   : > { %1124 = vmatpush.bf16.msra.mxu3 %v1102_v15 }
  0x30   : > { %530 = vmatpush.bf16.msra.mxu1 %v1101_v16 }
  0x31   : > { %1125 = vmatpush.bf16.msra.mxu3 %v1101_v16 }
  0x35   : > { %1126 = vmatpush.bf16.msrb.mxu3 %v1116_v58 }
  0x39   : > { %1127 = vmatpush.bf16.msrb.mxu3 %v1115_v62 }
  0x3b   : > { %1016 = vmatmul.msk.bf16.gmra.mxu0 %vm357_vm0, %v1093_v4 }
  0x3d   : > { %1128 = vmatpush.bf16.msrb.mxu3 %v1114_v0 }
  0x41   : > { %1129 = vmatpush.bf16.msrb.mxu3 %v1113_v1 }
  0x4b   : > { %1017 = vmatmul.msk.bf16.gmra.mxu0 %vm357_vm0, %v1094_v5  ;;  %v1112_v5 = vld [vmem:[%s1663_s5 + $0x18] sm:$0xff] }
  0x4c   : > { %668 = vmatpush.bf16.msra.mxu2 %v1112_v5  ;;  %1130 = vmatpush.bf16.msrb.mxu3 %v1112_v5 }
  0x50   : > { %669 = vmatpush.bf16.msra.mxu2 %v1111_v9  ;;  %1131 = vmatpush.bf16.msrb.mxu3 %v1111_v9 }
  0x54   : > { %670 = vmatpush.bf16.msra.mxu2 %v1110_v11  ;;  %1132 = vmatpush.bf16.msrb.mxu3 %v1110_v11 }
  0x58   : > { %671 = vmatpush.bf16.msra.mxu2 %v1109_v12  ;;  %1133 = vmatpush.bf16.msrb.mxu3 %v1109_v12  ;;  %v1177_v12 = vld [vmem:[%s1664_s6] ss:$0 sm:$0xff] }
  0x5b   : > { %1018 = vmatmul.msk.bf16.gmra.mxu0 %vm357_vm0, %v1095_v6 }
  0x6b   : > { %1019 = vmatmul.msk.bf16.gmra.mxu0 %vm357_vm0, %v1096_v8 }
  0x7b   : > { %1020 = vmatmul.msk.bf16.gmra.mxu0 %vm357_vm0, %v1097_v13 }
  0x8b   : > { %1021 = vmatmul.msk.bf16.gmra.mxu0 %vm357_vm0, %v1098_v17 }
  0x98   : > { %v391_v18 = vpop.f32.mrf.mxu0 }
  0x99   : > { %v392_v20 = vadd.f32 %v1451_v19, %v391_v18 }
  0x9b   : > { %v431_v23 = vmax.f32 %v392_v20, 0.0 }
  0xa0   : > { %v393_v21 = vpop.f32.mrf.mxu0 }
  0xa1   : > { %v394_v22 = vadd.f32 %v1451_v19, %v393_v21  ;;  %v1176_v21 = vld [vmem:[%s1662_s4] ss:$0 sm:$0xff] }
  0xa3   : > { %v432_v24 = vmax.f32 %v394_v22, 0.0 }
  0xa5   : > { %v447_v25 = vpack.c.bf16 %v432_v24, %v431_v23 }
  0xa7   : > { %531 = vmatmul.bf16.vlgmr.msra.gmra.mxu1 %v447_v25 }
  0xa8   : > { %v396_v26 = vpop.f32.mrf.mxu0 }
  0xa9   : > { %v397_v27 = vadd.f32 %v1451_v19, %v396_v26 }
  0xab   : > { %v433_v30 = vmax.f32 %v397_v27, 0.0 }
  0xb0   : > { %v398_v28 = vpop.f32.mrf.mxu0 }
  0xb1   : > { %v399_v29 = vadd.f32 %v1451_v19, %v398_v28 }
  0xb3   : > { %v434_v31 = vmax.f32 %v399_v29, 0.0 }
  0xb5   : > { %v448_v32 = vpack.c.bf16 %v434_v31, %v433_v30 }
  0xb7   : > { %536 = vmatmul.bf16.gmra.mxu1 %v448_v32 }
  0xb8   : > { %v401_v33 = vpop.f32.mrf.mxu0 }
  0xb9   : > { %v402_v34 = vadd.f32 %v1451_v19, %v401_v33 }
  0xbb   : > { %v435_v37 = vmax.f32 %v402_v34, 0.0 }
  0xc0   : > { %v403_v35 = vpop.f32.mrf.mxu0 }
  0xc1   : > { %v404_v36 = vadd.f32 %v1451_v19, %v403_v35 }
  0xc3   : > { %v436_v38 = vmax.f32 %v404_v36, 0.0 }
  0xc5   : > { %v449_v39 = vpack.c.bf16 %v436_v38, %v435_v37 }
  0xc7   : > { %541 = vmatmul.bf16.gmra.mxu1 %v449_v39 }
  0xc8   : > { %v406_v40 = vpop.f32.mrf.mxu0 }
  0xc9   : > { %v407_v41 = vadd.f32 %v1451_v19, %v406_v40 }
  0xcb   : > { %v437_v44 = vmax.f32 %v407_v41, 0.0 }
  0xd0   : > { %v408_v42 = vpop.f32.mrf.mxu0 }
  0xd1   : > { %v409_v43 = vadd.f32 %v1451_v19, %v408_v42 }
  0xd3   : > { %v438_v45 = vmax.f32 %v409_v43, 0.0 }
  0xd5   : > { %v450_v46 = vpack.c.bf16 %v438_v45, %v437_v44 }
  0xd7   : > { %546 = vmatmul.bf16.gmra.mxu1 %v450_v46 }
  0xd8   : > { %v411_v47 = vpop.f32.mrf.mxu0 }
  0xd9   : > { %v412_v48 = vadd.f32 %v1451_v19, %v411_v47 }
  0xdb   : > { %v439_v51 = vmax.f32 %v412_v48, 0.0 }
  0xe0   : > { %v413_v49 = vpop.f32.mrf.mxu0 }
  0xe1   : > { %v414_v50 = vadd.f32 %v1451_v19, %v413_v49 }
  0xe3   : > { %v440_v52 = vmax.f32 %v414_v50, 0.0 }
  0xe5   : > { %v451_v53 = vpack.c.bf16 %v440_v52, %v439_v51 }
  0xe7   : > { %551 = vmatmul.bf16.gmra.mxu1 %v451_v53 }
  0xe8   : > { %v416_v54 = vpop.f32.mrf.mxu0 }
  0xe9   : > { %v417_v55 = vadd.f32 %v1451_v19, %v416_v54 }
  0xeb   : > { %v441_v59 = vmax.f32 %v417_v55, 0.0 }
  0xf0   : > { %v418_v56 = vpop.f32.mrf.mxu0 }
  0xf1   : > { %v419_v57 = vadd.f32 %v1451_v19, %v418_v56 }
  0xf3   : > { %v442_v60 = vmax.f32 %v419_v57, 0.0 }
  0xf5   : > { %v452_v61 = vpack.c.bf16 %v442_v60, %v441_v59 }
  0xf7   : > { %556 = vmatmul.bf16.gmra.mxu1 %v452_v61 }
  0xf8   : > { %v421_v63 = vpop.f32.mrf.mxu0 }
  0xf9   : > { %v422_v2 = vadd.f32 %v1451_v19, %v421_v63 }
  0xfb   : > { %v443_v6 = vmax.f32 %v422_v2, 0.0 }
 0x100   : > { %v423_v3 = vpop.f32.mrf.mxu0 }
 0x101   : > { %v424_v4 = vadd.f32 %v1451_v19, %v423_v3 }
 0x103   : > { %v444_v7 = vmax.f32 %v424_v4, 0.0 }
 0x105   : > { %v453_v8 = vpack.c.bf16 %v444_v7, %v443_v6 }
 0x107   : > { %561 = vmatmul.bf16.vlgmr.msra.gmra.mxu3 %v453_v8 }
 0x108   : > { %v426_v10 = vpop.f32.mrf.mxu0 }
 0x109   : > { %v427_v13 = vadd.f32 %v1451_v19, %v426_v10 }
 0x10b   : > { %v445_v16 = vmax.f32 %v427_v13, 0.0 }
 0x110   : > { %v428_v14 = vpop.f32.mrf.mxu0 }
 0x111   : > { %v429_v15 = vadd.f32 %v1451_v19, %v428_v14 }
 0x113   : > { %v446_v17 = vmax.f32 %v429_v15, 0.0 }
 0x115   : > { %v454_v18 = vpack.c.bf16 %v446_v17, %v445_v16 }
 0x117   : > { %566 = vmatmul.bf16.gmra.mxu3 %v454_v18 }
 0x124   : > { %v532_v20 = vpop.f32.mrf.mxu1 }
 0x125   : > { %v533_v22 = vadd.f32 %v1176_v21, %v532_v20 }
 0x127   : > { %v572_v25 = vmax.f32 %v533_v22, 0.0 }
 0x12c   : > { %v534_v23 = vpop.f32.mrf.mxu1 }
 0x12d   : > { %v535_v24 = vadd.f32 %v1176_v21, %v534_v23 }
 0x12f   : > { %v573_v26 = vmax.f32 %v535_v24, 0.0 }
 0x131   : > { %v588_v27 = vpack.c.bf16 %v573_v26, %v572_v25 }
 0x133   : > { %672 = vmatmul.bf16.vlgmr.msra.gmra.mxu2 %v588_v27 }
 0x134   : > { %v537_v28 = vpop.f32.mrf.mxu1 }
 0x135   : > { %v538_v29 = vadd.f32 %v1176_v21, %v537_v28 }
 0x137   : > { %v574_v31 = vmax.f32 %v538_v29, 0.0 }
 0x13c   : > { %v539_v30 = vpop.f32.mrf.mxu1 }
 0x13d   : > { %v540_v19 = vadd.f32 %v1176_v21, %v539_v30 }
 0x13f   : > { %v575_v32 = vmax.f32 %v540_v19, 0.0 }
 0x141   : > { %v589_v33 = vpack.c.bf16 %v575_v32, %v574_v31 }
 0x143   : > { %677 = vmatmul.bf16.gmra.mxu2 %v589_v33 }
 0x144   : > { %v542_v34 = vpop.f32.mrf.mxu1 }
 0x145   : > { %v543_v35 = vadd.f32 %v1176_v21, %v542_v34 }
 0x147   : > { %v576_v38 = vmax.f32 %v543_v35, 0.0 }
 0x14c   : > { %v544_v36 = vpop.f32.mrf.mxu1 }
 0x14d   : > { %v545_v37 = vadd.f32 %v1176_v21, %v544_v36 }
 0x14f   : > { %v577_v39 = vmax.f32 %v545_v37, 0.0 }
 0x151   : > { %v590_v40 = vpack.c.bf16 %v577_v39, %v576_v38 }
 0x153   : > { %682 = vmatmul.bf16.gmra.mxu2 %v590_v40 }
 0x154   : > { %v547_v41 = vpop.f32.mrf.mxu1 }
 0x155   : > { %v548_v42 = vadd.f32 %v1176_v21, %v547_v41 }
 0x157   : > { %v578_v45 = vmax.f32 %v548_v42, 0.0 }
 0x15c   : > { %v549_v43 = vpop.f32.mrf.mxu1 }
 0x15d   : > { %v550_v44 = vadd.f32 %v1176_v21, %v549_v43 }
 0x15f   : > { %v579_v46 = vmax.f32 %v550_v44, 0.0 }
 0x161   : > { %v591_v47 = vpack.c.bf16 %v579_v46, %v578_v45 }
 0x163   : > { %687 = vmatmul.bf16.gmra.mxu2 %v591_v47 }
 0x164   : > { %v552_v48 = vpop.f32.mrf.mxu1 }
 0x165   : > { %v553_v49 = vadd.f32 %v1176_v21, %v552_v48 }
 0x167   : > { %v580_v52 = vmax.f32 %v553_v49, 0.0 }
 0x16c   : > { %v554_v50 = vpop.f32.mrf.mxu1 }
 0x16d   : > { %v555_v51 = vadd.f32 %v1176_v21, %v554_v50 }
 0x16f   : > { %v581_v53 = vmax.f32 %v555_v51, 0.0 }
 0x171   : > { %v592_v54 = vpack.c.bf16 %v581_v53, %v580_v52 }
 0x173   : > { %692 = vmatmul.bf16.gmra.mxu2 %v592_v54 }
 0x174   : > { %v557_v55 = vpop.f32.mrf.mxu1 }
 0x175   : > { %v558_v56 = vadd.f32 %v1176_v21, %v557_v55 }
 0x177   : > { %v582_v59 = vmax.f32 %v558_v56, 0.0 }
 0x17c   : > { %v559_v57 = vpop.f32.mrf.mxu1 }
 0x17d   : > { %v560_v58 = vadd.f32 %v1176_v21, %v559_v57 }
 0x17f   : > { %v583_v60 = vmax.f32 %v560_v58, 0.0 }
 0x181   : > { %v593_v61 = vpack.c.bf16 %v583_v60, %v582_v59 }
 0x183   : > { %697 = vmatmul.bf16.gmra.mxu2 %v593_v61 }
 0x18a   : > { %v562_v62 = vpop.f32.mrf.mxu3 }
 0x18b   : > { %v563_v63 = vadd.f32 %v1176_v21, %v562_v62 }
 0x18d   : > { %v584_v2 = vmax.f32 %v563_v63, 0.0 }
 0x192   : > { %v564_v0 = vpop.f32.mrf.mxu3 }
 0x193   : > { %v565_v1 = vadd.f32 %v1176_v21, %v564_v0 }
 0x195   : > { %v585_v3 = vmax.f32 %v565_v1, 0.0 }
 0x197   : > { %v594_v4 = vpack.c.bf16 %v585_v3, %v584_v2 }
 0x199   : > { %702 = vmatmul.bf16.vlgmr.msrb.gmra.mxu3 %v594_v4 }
 0x19a   : > { %v567_v5 = vpop.f32.mrf.mxu3 }
 0x19b   : > { %v568_v6 = vadd.f32 %v1176_v21, %v567_v5 }
 0x19d   : > { %v586_v9 = vmax.f32 %v568_v6, 0.0 }
 0x1a2   : > { %v569_v7 = vpop.f32.mrf.mxu3 }
 0x1a3   : > { %v570_v8 = vadd.f32 %v1176_v21, %v569_v7 }
 0x1a5   : > { %v587_v10 = vmax.f32 %v570_v8, 0.0 }
 0x1a7   : > { %v595_v11 = vpack.c.bf16 %v587_v10, %v586_v9 }
 0x1a9   : > { %707 = vmatmul.bf16.gmra.mxu3 %v595_v11 }
 0x1b6   : > { %v673_v13 = vpop.f32.mrf.mxu2 }
 0x1b7   : > { %v674_v14 = vadd.f32 %v1177_v12, %v673_v13 }
 0x1b9   : > { %713 = vmax.xlane.f32.xlu0 %v674_v14 }
 0x1be   : > { %v675_v15 = vpop.f32.mrf.mxu2 }
 0x1bf   : > { %v676_v16 = vadd.f32 %v1177_v12, %v675_v15 }
 0x1c1   : > { %715 = vmax.xlane.f32.xlu0 %v676_v16 }
 0x1c6   : > { %v678_v17 = vpop.f32.mrf.mxu2 }
 0x1c7   : > { %v679_v18 = vadd.f32 %v1177_v12, %v678_v17 }
 0x1c9   : > { %717 = vmax.xlane.f32.xlu1 %v679_v18 }
 0x1ce   : > { %v680_v20 = vpop.f32.mrf.mxu2 }
 0x1cf   : > { %v681_v22 = vadd.f32 %v1177_v12, %v680_v20 }
 0x1d1   : > { %719 = vmax.xlane.f32.xlu1 %v681_v22 }
 0x1d6   : > { %v683_v21 = vpop.f32.mrf.mxu2 }
 0x1d7   : > { %v684_v23 = vadd.f32 %v1177_v12, %v683_v21 }
 0x1d9   : > { %721 = vmax.xlane.f32.xlu2 %v684_v23 }
 0x1de   : > { %v685_v24 = vpop.f32.mrf.mxu2 }
 0x1df   : > { %v686_v25 = vadd.f32 %v1177_v12, %v685_v24 }
 0x1e1   : > { %723 = vmax.xlane.f32.xlu2 %v686_v25 }
 0x1e6   : > { %v688_v26 = vpop.f32.mrf.mxu2 }
 0x1e7   : > { %v1499_v27 = vadd.f32 %v1177_v12, %v688_v26 }
 0x1e9   : > { %725 = vmax.xlane.f32.xlu0 %v1499_v27 }
 0x1ee   : > { %v690_v28 = vpop.f32.mrf.mxu2 }
 0x1ef   : > { %v1502_v29 = vadd.f32 %v1177_v12, %v690_v28 }
 0x1f1   : > { %727 = vmax.xlane.f32.xlu1 %v1502_v29 }
 0x1f6   : > { %v693_v30 = vpop.f32.mrf.mxu2 }
 0x1f7   : > { %v1505_v19 = vadd.f32 %v1177_v12, %v693_v30 }
 0x1f9   : > { %729 = vmax.xlane.f32.xlu2 %v1505_v19 }
 0x1fe   : > { %v695_v31 = vpop.f32.mrf.mxu2 }
 0x1ff   : > { %v1508_v32 = vadd.f32 %v1177_v12, %v695_v31 }
 0x201   : > { %731 = vmax.xlane.f32.xlu0 %v1508_v32 }
 0x206   : > { %v698_v33 = vpop.f32.mrf.mxu2 }
 0x207   : > { %v1511_v34 = vadd.f32 %v1177_v12, %v698_v33 }
 0x209   : > { %733 = vmax.xlane.f32.xlu1 %v1511_v34 }
 0x20e   : > { %v700_v35 = vpop.f32.mrf.mxu2 }
 0x20f   : > { %v1514_v36 = vadd.f32 %v1177_v12, %v700_v35 }
 0x211   : > { %735 = vmax.xlane.f32.xlu2 %v1514_v36 }
 0x21c   : > { %v703_v37 = vpop.f32.mrf.mxu3 }
 0x21d   : > { %v1517_v38 = vadd.f32 %v1177_v12, %v703_v37 }
 0x21f   : > { %737 = vmax.xlane.f32.xlu0 %v1517_v38 }
 0x224   : > { %v705_v39 = vpop.f32.mrf.mxu3 }
 0x225   : > { %v1520_v40 = vadd.f32 %v1177_v12, %v705_v39 }
 0x227   : > { %739 = vmax.xlane.f32.xlu1 %v1520_v40 }
 0x22c   : > { %v708_v41 = vpop.f32.mrf.mxu3  ;;  %v714_v42 = vpop.xlane.xlu0 %713 }
 0x22d   : > { %v1523_v43 = vadd.f32 %v1177_v12, %v708_v41  ;;  %v1525_v44 = vsub.f32 %v674_v14, %v714_v42 }
 0x22f   : > { %v761_v45 = vmul.f32 1.442695, %v1525_v44  ;;  %741 = vmax.xlane.f32.xlu2 %v1523_v43 }
 0x231   : > { %1178 = vpow2.f32 %v761_v45 }
 0x234   : > { %v710_v46 = vpop.f32.mrf.mxu3  ;;  %v716_v47 = vpop.xlane.xlu0 %715 }
 0x235   : > { %v1529_v48 = vadd.f32 %v1177_v12, %v710_v46  ;;  %v1531_v49 = vsub.f32 %v676_v16, %v716_v47 }
 0x237   : > { %v1179_v50 = vpop.eup %1178  ;;  %v763_v51 = vmul.f32 1.442695, %v1531_v49  ;;  %743 = vmax.xlane.f32.xlu0 %v1529_v48 }
 0x238   : > { %793 = vadd.xlane.f32.xlu1 %v1179_v50 }
 0x239   : > { %1180 = vpow2.f32 %v763_v51 }
 0x23c   : > { %v718_v52 = vpop.xlane.xlu1 %717 }
 0x23d   : > { %v1535_v53 = vsub.f32 %v679_v18, %v718_v52 }
 0x23f   : > { %v1181_v54 = vpop.eup %1180  ;;  %v765_v55 = vmul.f32 1.442695, %v1535_v53 }
 0x240   : > { %795 = vadd.xlane.f32.xlu2 %v1181_v54 }
 0x241   : > { %1182 = vpow2.f32 %v765_v55 }
 0x244   : > { %v720_v56 = vpop.xlane.xlu1 %719 }
 0x245   : > { %v1538_v57 = vsub.f32 %v681_v22, %v720_v56 }
 0x247   : > { %v1183_v58 = vpop.eup %1182  ;;  %v767_v59 = vmul.f32 1.442695, %v1538_v57 }
 0x248   : > { %797 = vadd.xlane.f32.xlu0 %v1183_v58 }
 0x249   : > { %1184 = vpow2.f32 %v767_v59 }
 0x24c   : > { %v722_v60 = vpop.xlane.xlu2 %721 }
 0x24d   : > { %v1541_v61 = vsub.f32 %v684_v23, %v722_v60 }
 0x24f   : > { %v1185_v62 = vpop.eup %1184  ;;  %v769_v63 = vmul.f32 1.442695, %v1541_v61 }
 0x250   : > { %799 = vadd.xlane.f32.xlu1 %v1185_v62 }
 0x251   : > { %1186 = vpow2.f32 %v769_v63 }
 0x254   : > { %v724_v0 = vpop.xlane.xlu2 %723 }
 0x255   : > { %v1544_v1 = vsub.f32 %v686_v25, %v724_v0 }
 0x257   : > { %v1187_v2 = vpop.eup %1186  ;;  %v771_v3 = vmul.f32 1.442695, %v1544_v1 }
 0x258   : > { %801 = vadd.xlane.f32.xlu2 %v1187_v2 }
 0x259   : > { %1188 = vpow2.f32 %v771_v3 }
 0x25c   : > { %v726_v4 = vpop.xlane.xlu0 %725 }
 0x25d   : > { %v1548_v5 = vsub.f32 %v1499_v27, %v726_v4 }
 0x25f   : > { %v1189_v6 = vpop.eup %1188  ;;  %v773_v7 = vmul.f32 1.442695, %v1548_v5 }
 0x260   : > { %803 = vadd.xlane.f32.xlu0 %v1189_v6 }
 0x261   : > { %1190 = vpow2.f32 %v773_v7 }
 0x264   : > { %v728_v8 = vpop.xlane.xlu1 %727 }
 0x265   : > { %v1552_v9 = vsub.f32 %v1502_v29, %v728_v8 }
 0x267   : > { %v1191_v10 = vpop.eup %1190  ;;  %v775_v11 = vmul.f32 1.442695, %v1552_v9 }
 0x268   : > { %805 = vadd.xlane.f32.xlu1 %v1191_v10 }
 0x269   : > { %1192 = vpow2.f32 %v775_v11 }
 0x26c   : > { %v730_v12 = vpop.xlane.xlu2 %729 }
 0x26d   : > { %v1556_v13 = vsub.f32 %v1505_v19, %v730_v12 }
 0x26f   : > { %v1193_v14 = vpop.eup %1192  ;;  %v777_v15 = vmul.f32 1.442695, %v1556_v13 }
 0x270   : > { %807 = vadd.xlane.f32.xlu2 %v1193_v14 }
 0x271   : > { %1194 = vpow2.f32 %v777_v15 }
 0x274   : > { %v732_v16 = vpop.xlane.xlu0 %731 }
 0x275   : > { %v1560_v17 = vsub.f32 %v1508_v32, %v732_v16 }
 0x277   : > { %v1195_v18 = vpop.eup %1194  ;;  %v779_v20 = vmul.f32 1.442695, %v1560_v17 }
 0x278   : > { %809 = vadd.xlane.f32.xlu0 %v1195_v18 }
 0x279   : > { %1196 = vpow2.f32 %v779_v20 }
 0x27c   : > { %v734_v22 = vpop.xlane.xlu1 %733 }
 0x27d   : > { %v1564_v21 = vsub.f32 %v1511_v34, %v734_v22 }
 0x27f   : > { %v1197_v23 = vpop.eup %1196  ;;  %v781_v24 = vmul.f32 1.442695, %v1564_v21 }
 0x280   : > { %811 = vadd.xlane.f32.xlu1 %v1197_v23 }
 0x281   : > { %1198 = vpow2.f32 %v781_v24 }
 0x284   : > { %v736_v25 = vpop.xlane.xlu2 %735 }
 0x285   : > { %v1568_v26 = vsub.f32 %v1514_v36, %v736_v25 }
 0x287   : > { %v1199_v27 = vpop.eup %1198  ;;  %v783_v28 = vmul.f32 1.442695, %v1568_v26 }
 0x288   : > { %813 = vadd.xlane.f32.xlu2 %v1199_v27 }
 0x289   : > { %1200 = vpow2.f32 %v783_v28 }
 0x28f   : > { %v1201_v29 = vpop.eup %1200 }
 0x290   : > { %815 = vadd.xlane.f32.xlu0 %v1201_v29 }
 0x292   : > { %v738_v30 = vpop.xlane.xlu0 %737 }
 0x293   : > { %v1572_v19 = vsub.f32 %v1517_v38, %v738_v30 }
 0x295   : > { %v785_v31 = vmul.f32 1.442695, %v1572_v19 }
 0x297   : > { %1202 = vpow2.f32 %v785_v31 }
 0x29a   : > { %v740_v32 = vpop.xlane.xlu1 %739 }
 0x29b   : > { %v1576_v33 = vsub.f32 %v1520_v40, %v740_v32 }
 0x29d   : > { %v1203_v34 = vpop.eup %1202  ;;  %v787_v35 = vmul.f32 1.442695, %v1576_v33 }
 0x29e   : > { %817 = vadd.xlane.f32.xlu1 %v1203_v34 }
 0x29f   : > { %1204 = vpow2.f32 %v787_v35 }
 0x2a2   : > { %v742_v36 = vpop.xlane.xlu2 %741 }
 0x2a3   : > { %v1580_v37 = vsub.f32 %v1523_v43, %v742_v36 }
 0x2a5   : > { %v1205_v38 = vpop.eup %1204  ;;  %v789_v39 = vmul.f32 1.442695, %v1580_v37 }
 0x2a6   : > { %819 = vadd.xlane.f32.xlu2 %v1205_v38 }
 0x2a7   : > { %1206 = vpow2.f32 %v789_v39 }
 0x2aa   : > { %v744_v41 = vpop.xlane.xlu0 %743 }
 0x2ab   : > { %v1584_v40 = vsub.f32 %v1529_v48, %v744_v41  ;;  %v794_v42 = vpop.xlane.xlu1 %793 }
 0x2ac   : > { %1208 = vlog2.f32 %v794_v42 }
 0x2ad   : > { %v1207_v45 = vpop.eup %1206  ;;  %v791_v46 = vmul.f32 1.442695, %v1584_v40 }
 0x2ae   : > { %821 = vadd.xlane.f32.xlu0 %v1207_v45 }
 0x2af   : > { %1210 = vpow2.f32 %v791_v46 }
 0x2b2   : > { %v1209_v43 = vpop.eup %1208 }
 0x2b3   : > { %v826_v47 = vmul.f32 0.6931472, %v1209_v43  ;;  %v796_v50 = vpop.xlane.xlu2 %795 }
 0x2b4   : > { %1212 = vlog2.f32 %v796_v50 }
 0x2b5   : > { %v1211_v51 = vpop.eup %1210  ;;  %v857_v52 = vsub.f32 %v1525_v44, %v826_v47 }
 0x2b6   : > { %823 = vadd.xlane.f32.xlu1 %v1211_v51 }
 0x2b7   : > { %873 = vst [vmem:[%s1591_s20] sm:$0xff] %v857_v52 }
 0x2ba   : > { %v1213_v48 = vpop.eup %1212 }
 0x2bb   : > { %v828_v54 = vmul.f32 0.6931472, %v1213_v48  ;;  %v798_v55 = vpop.xlane.xlu0 %797 }
 0x2bc   : > { %1214 = vlog2.f32 %v798_v55 }
 0x2bd   : > { %v858_v56 = vsub.f32 %v1531_v49, %v828_v54 }
 0x2bf   : > { %874 = vst [vmem:[%s1591_s20 + $0x8] sm:$0xff] %v858_v56 }
 0x2c2   : > { %v1215_v58 = vpop.eup %1214 }
 0x2c3   : > { %v830_v59 = vmul.f32 0.6931472, %v1215_v58  ;;  %v800_v60 = vpop.xlane.xlu1 %799 }
 0x2c4   : > { %1216 = vlog2.f32 %v800_v60 }
 0x2c5   : > { %v859_v44 = vsub.f32 %v1535_v53, %v830_v59 }
 0x2c7   : > { %875 = vst [vmem:[%s1591_s20 + $0x10] sm:$0xff] %v859_v44 }
 0x2ca   : > { %v1217_v62 = vpop.eup %1216 }
 0x2cb   : > { %v832_v63 = vmul.f32 0.6931472, %v1217_v62  ;;  %v802_v0 = vpop.xlane.xlu2 %801 }
 0x2cc   : > { %1218 = vlog2.f32 %v802_v0 }
 0x2cd   : > { %v860_v2 = vsub.f32 %v1538_v57, %v832_v63 }
 0x2cf   : > { %876 = vst [vmem:[%s1591_s20 + $0x18] sm:$0xff] %v860_v2 }
 0x2d2   : > { %v1219_v3 = vpop.eup %1218 }
 0x2d3   : > { %v834_v4 = vmul.f32 0.6931472, %v1219_v3  ;;  %v804_v49 = vpop.xlane.xlu0 %803 }
 0x2d4   : > { %1220 = vlog2.f32 %v804_v49 }
 0x2d5   : > { %v861_v6 = vsub.f32 %v1541_v61, %v834_v4 }
 0x2d7   : > { %877 = vst [vmem:[%s1591_s20 + $0x20] sm:$0xff] %v861_v6 }
 0x2da   : > { %v1221_v7 = vpop.eup %1220 }
 0x2db   : > { %v836_v8 = vmul.f32 0.6931472, %v1221_v7  ;;  %v806_v53 = vpop.xlane.xlu1 %805 }
 0x2dc   : > { %1222 = vlog2.f32 %v806_v53 }
 0x2dd   : > { %v862_v10 = vsub.f32 %v1544_v1, %v836_v8 }
 0x2df   : > { %878 = vst [vmem:[%s1591_s20 + $0x28] sm:$0xff] %v862_v10 }
 0x2e2   : > { %v1223_v11 = vpop.eup %1222 }
 0x2e3   : > { %v838_v12 = vmul.f32 0.6931472, %v1223_v11  ;;  %v808_v57 = vpop.xlane.xlu2 %807 }
 0x2e4   : > { %1224 = vlog2.f32 %v808_v57 }
 0x2e5   : > { %v863_v14 = vsub.f32 %v1548_v5, %v838_v12 }
 0x2e7   : > { %879 = vst [vmem:[%s1591_s20 + $0x30] sm:$0xff] %v863_v14 }
 0x2ea   : > { %v1225_v15 = vpop.eup %1224 }
 0x2eb   : > { %v840_v16 = vmul.f32 0.6931472, %v1225_v15  ;;  %v810_v61 = vpop.xlane.xlu0 %809 }
 0x2ec   : > { %1226 = vlog2.f32 %v810_v61 }
 0x2ed   : > { %v864_v18 = vsub.f32 %v1552_v9, %v840_v16 }
 0x2ef   : > { %880 = vst [vmem:[%s1591_s20 + $0x38] sm:$0xff] %v864_v18 }
 0x2f2   : > { %v1227_v20 = vpop.eup %1226 }
 0x2f3   : > { %v842_v22 = vmul.f32 0.6931472, %v1227_v20  ;;  %v812_v1 = vpop.xlane.xlu1 %811 }
 0x2f4   : > { %1228 = vlog2.f32 %v812_v1 }
 0x2f5   : > { %v865_v23 = vsub.f32 %v1556_v13, %v842_v22 }
 0x2f7   : > { %881 = vst [vmem:[%s1591_s20 + $0x40] sm:$0xff] %v865_v23 }
 0x2fa   : > { %v1229_v24 = vpop.eup %1228 }
 0x2fb   : > { %v844_v5 = vmul.f32 0.6931472, %v1229_v24  ;;  %v814_v25 = vpop.xlane.xlu2 %813 }
 0x2fc   : > { %1230 = vlog2.f32 %v814_v25 }
 0x2fd   : > { %v866_v27 = vsub.f32 %v1560_v17, %v844_v5 }
 0x2ff   : > { %882 = vst [vmem:[%s1591_s20 + $0x48] sm:$0xff] %v866_v27 }
 0x302   : > { %v1231_v28 = vpop.eup %1230 }
 0x303   : > { %v846_v29 = vmul.f32 0.6931472, %v1231_v28  ;;  %v816_v9 = vpop.xlane.xlu0 %815 }
 0x304   : > { %1232 = vlog2.f32 %v816_v9 }
 0x305   : > { %v867_v30 = vsub.f32 %v1564_v21, %v846_v29 }
 0x307   : > { %883 = vst [vmem:[%s1591_s20 + $0x50] sm:$0xff] %v867_v30 }
 0x30a   : > { %v1233_v31 = vpop.eup %1232 }
 0x30b   : > { %v848_v32 = vmul.f32 0.6931472, %v1233_v31 }
 0x30d   : > { %v868_v13 = vsub.f32 %v1568_v26, %v848_v32 }
 0x30f   : > { %884 = vst [vmem:[%s1591_s20 + $0x58] sm:$0xff] %v868_v13 }
 0x311   : > { %v818_v34 = vpop.xlane.xlu1 %817 }
 0x312   : > { %1234 = vlog2.f32 %v818_v34 }
 0x318   : > { %v1235_v35 = vpop.eup %1234 }
 0x319   : > { %v850_v17 = vmul.f32 0.6931472, %v1235_v35  ;;  %v820_v36 = vpop.xlane.xlu2 %819 }
 0x31a   : > { %1236 = vlog2.f32 %v820_v36 }
 0x31b   : > { %v869_v38 = vsub.f32 %v1572_v19, %v850_v17 }
 0x31d   : > { %885 = vst [vmem:[%s1591_s20 + $0x60] sm:$0xff] %v869_v38 }
 0x320   : > { %v1237_v21 = vpop.eup %1236 }
 0x321   : > { %v852_v39 = vmul.f32 0.6931472, %v1237_v21  ;;  %v822_v41 = vpop.xlane.xlu0 %821 }
 0x322   : > { %1238 = vlog2.f32 %v822_v41 }
 0x323   : > { %v870_v42 = vsub.f32 %v1576_v33, %v852_v39 }
 0x325   : > { %886 = vst [vmem:[%s1591_s20 + $0x68] sm:$0xff] %v870_v42 }
 0x328   : > { %v1239_v26 = vpop.eup %1238 }
 0x329   : > { %v854_v45 = vmul.f32 0.6931472, %v1239_v26  ;;  %v824_v46 = vpop.xlane.xlu1 %823 }
 0x32a   : > { %1240 = vlog2.f32 %v824_v46 }
 0x32b   : > { %v871_v43 = vsub.f32 %v1580_v37, %v854_v45 }
 0x32d   : > { %887 = vst [vmem:[%s1591_s20 + $0x70] sm:$0xff] %v871_v43 }
 0x330   : > { %v1241_v19 = vpop.eup %1240 }
 0x331   : > { %v856_v33 = vmul.f32 0.6931472, %v1241_v19 }
 0x333   : > { %v872_v47 = vsub.f32 %v1584_v40, %v856_v33 }
 0x335   : > { %888 = vst [vmem:[%s1591_s20 + $0x78] sm:$0xff] %v872_v47 }
 0x336   : > { %1269 = shalt.err (!%p1266_p3)
}
 0x337   : > { %s1306_s18 = smov 128   ;;  %s1307_s20 = smov 8  }
 0x338   : > { %1134 = dma.vmem_to_hbm [thread:$0]  (%p1386_p5), %s903_s9, 2048, %s905_s21, %s890_s28, %s1306_s18, %s1306_s18, %s1307_s20  }
 0x339 PF: > { %p1140_p4 = scmp.ge.s32.totalorder %s1304_s27, 2  ;;  %s919_s23 = sand.u32 1, %s1292_s24  }
 0x33a   : > { %s920_s29 = scalar_lea.sflag [#allocation3], %s919_s23 }
 0x33b   : > { %p1137_p7 = pnand %p1140_p4, %p1390_p6 }
 0x33d   : > { %p1138_p8 = pneg %p1137_p7 }
 0x33f   : > { %1287 = dma.done.wait (%p1138_p8), %s920_s29, 2048  }
 0x340   : > { %1289 = vsyncadd (%p1138_p8), %s920_s29, 4294965248  ;;  %p17_p9 = scmp.ge.s32.totalorder %s1373_s30, 4   ;;  %s1668_s24 = smov %s1296_s25 }
 0x341   : > { %s1669_s25 = smov %s1300_s26  ;;  %s1670_s26 = smov %s1384_s10 }
 0x342   : > { %s1671_s27 = smov %s1373_s30  ;;  %19 = sbr.rel (!%p17_p9) target bundleno = 3 (0x3), region = 83 }
 0x347   :  { %926 = vsyncpa [#allocation3], 1 }
 0x348   :  { %928 = vsyncpa [#allocation3 + $0x1], 1 }

</bundles_post_ra>
